<compile_context>
chip_gen: v7x
topology: tpu7x:2x2x1
jax: 0.10.0
libtpu: 0.0.40
codegen_flags: <defaults>
</compile_context>

<pallas_src>
import functools

import jax
import jax.numpy as jnp
from jax import lax
from jax.experimental import pallas as pl
from jax.experimental.pallas import tpu as pltpu

LN_EPS = 1e-5
BN_EPS = 1e-5
NEG_BIG = -1e30  # finite "minus infinity" for key masking (avoids inf-inf NaNs)


def _layernorm(h, gamma, beta):
    mu = jnp.mean(h, axis=-1, keepdims=True)
    var = jnp.mean((h - mu) ** 2, axis=-1, keepdims=True)
    return (h - mu) * lax.rsqrt(var + LN_EPS) * gamma + beta


def _pick_tile(n, candidates=(512, 256, 128, 64, 32, 16, 8)):
    for c in candidates:
        if c <= n and n % c == 0:
            return c
    return n


def _isize(dt):
    return jnp.dtype(dt).itemsize


def _cparams(semantics, est_bytes):
    # Default scoped VMEM (16 MiB v5e / 32 MiB v6e,v7x) is too small for the
    # larger row tiles; size the limit from the tiles (x2 for double buffers).
    limit = int(min(max(2 * int(est_bytes) + (8 << 20), 32 << 20), 100 << 20))
    return pltpu.CompilerParams(dimension_semantics=semantics,
                                vmem_limit_bytes=limit)


# ---------------------------------------------------------------------------
# Kernel 1: Scale(0.5, PreNorm(LN, FusedMLP)) + residual  (optionally fused
#           with the final norm_out LayerNorm for the ff2 call).
#   grid (row-tiles, H-chunks): hidden dim tiled, (row_tile, D) f32 accumulator.
# ---------------------------------------------------------------------------
def ff_block_kernel(x_ref, g_ref, b_ref, w1_ref, b1_ref, w2_ref, b2_ref,
                    *rest, final_ln):
    if final_ln:
        og_ref, ob_ref, o_ref, hnorm_sc, acc_sc = rest
    else:
        o_ref, hnorm_sc, acc_sc = rest

    j = pl.program_id(1)

    @pl.when(j == 0)
    def _():
        x = x_ref[...].astype(jnp.float32)
        hnorm_sc[...] = _layernorm(x, g_ref[...], b_ref[...]).astype(jnp.bfloat16)
        acc_sc[...] = jnp.zeros_like(acc_sc)

    u = jnp.dot(hnorm_sc[...], w1_ref[...],
                preferred_element_type=jnp.float32) + b1_ref[...]
    u = jax.nn.gelu(u, approximate=True)                        # gelu tanh approx
    acc_sc[...] += jnp.dot(u.astype(jnp.bfloat16), w2_ref[...],
                           preferred_element_type=jnp.float32)

    @pl.when(j == pl.num_programs(1) - 1)
    def _():
        x = x_ref[...].astype(jnp.float32)
        y = x + 0.5 * (acc_sc[...] + b2_ref[...])
        if final_ln:                                            # fused norm_out
            y = _layernorm(y, og_ref[...], ob_ref[...])
        o_ref[...] = y.astype(o_ref.dtype)


def ff_block(x2d, p, *, out_ln=None, out_dtype=jnp.bfloat16):
    R, D = x2d.shape
    H = p["w1"].shape[1]
    row_tile = _pick_tile(R)
    h_tile = _pick_tile(H)
    kern = functools.partial(ff_block_kernel, final_ln=out_ln is not None)

    in_specs = [
        pl.BlockSpec((row_tile, D), lambda i, j: (i, 0)),
        pl.BlockSpec((1, D), lambda i, j: (0, 0)),
        pl.BlockSpec((1, D), lambda i, j: (0, 0)),
        pl.BlockSpec((D, h_tile), lambda i, j: (0, j)),
        pl.BlockSpec((1, h_tile), lambda i, j: (0, j)),
        pl.BlockSpec((h_tile, D), lambda i, j: (j, 0)),
        pl.BlockSpec((1, D), lambda i, j: (0, 0)),
    ]
    args = [x2d, p["ln_g"], p["ln_b"], p["w1"], p["b1"], p["w2"], p["b2"]]
    if out_ln is not None:
        in_specs += [pl.BlockSpec((1, D), lambda i, j: (0, 0)),
                     pl.BlockSpec((1, D), lambda i, j: (0, 0))]
        args += [out_ln["ln_g"], out_ln["ln_b"]]

    est = (row_tile * D * (_isize(x2d.dtype) + _isize(out_dtype))
           + 2 * D * h_tile * 2                  # w1 + w2 bf16 chunks
           + (h_tile + 4 * D) * 4                # biases / LN params
           + row_tile * D * 6                    # bf16 + f32 scratch
           + row_tile * h_tile * 4)              # gelu intermediate

    return pl.pallas_call(
        kern,
        out_shape=jax.ShapeDtypeStruct((R, D), out_dtype),
        grid=(R // row_tile, H // h_tile),
        in_specs=in_specs,
        out_specs=pl.BlockSpec((row_tile, D), lambda i, j: (i, 0)),
        scratch_shapes=[pltpu.VMEM((row_tile, D), jnp.bfloat16),   # LN(x) cache
                        pltpu.VMEM((row_tile, D), jnp.float32)],   # accumulator
        compiler_params=_cparams(("parallel", "arbitrary"), est),
    )(*args)


# ---------------------------------------------------------------------------
# Kernel 2a: QKV projection -> three bf16 (B, H, T, hd) outputs, Q pre-scaled.
# ---------------------------------------------------------------------------
def qkv_kernel(x_ref, g_ref, b_ref, wq_ref, wk_ref, wv_ref,
               q_ref, k_ref, v_ref, *, q_scale):
    n_heads, head_dim = q_ref.shape[1], q_ref.shape[3]
    h = _layernorm(x_ref[0].astype(jnp.float32), g_ref[...], b_ref[...])
    h = h.astype(jnp.bfloat16)

    def project_and_split(out_ref, w_ref, scale):
        y = jnp.dot(h, w_ref[...], preferred_element_type=jnp.float32)
        if scale is not None:
            y = y * scale
        y = y.astype(jnp.bfloat16)
        for hh in range(n_heads):                              # static lane slices
            out_ref[0, hh, :, :] = y[:, hh * head_dim:(hh + 1) * head_dim]

    project_and_split(q_ref, wq_ref, q_scale)   # Q pre-scaled by head_dim**-0.5
    project_and_split(k_ref, wk_ref, None)
    project_and_split(v_ref, wv_ref, None)


def qkv_proj(x, p, *, n_heads, head_dim):
    B, T, D = x.shape
    Dh = n_heads * head_dim
    tq = _pick_tile(T, (512, 256, 128, 64, 32, 16, 8))
    kern = functools.partial(qkv_kernel, q_scale=float(head_dim) ** -0.5)
    head_shape = jax.ShapeDtypeStruct((B, n_heads, T, head_dim), jnp.bfloat16)

    est = (tq * D * _isize(x.dtype) + 3 * D * Dh * 2 + 3 * tq * Dh * 2
           + tq * Dh * 4 + 2 * D * 4)
    return pl.pallas_call(
        kern,
        out_shape=(head_shape, head_shape, head_shape),
        grid=(B, T // tq),
        in_specs=[
            pl.BlockSpec((1, tq, D), lambda b, i: (b, i, 0)),
            pl.BlockSpec((1, D), lambda b, i: (0, 0)),
            pl.BlockSpec((1, D), lambda b, i: (0, 0)),
            pl.BlockSpec((D, Dh), lambda b, i: (0, 0)),
            pl.BlockSpec((D, Dh), lambda b, i: (0, 0)),
            pl.BlockSpec((D, Dh), lambda b, i: (0, 0)),
        ],
        out_specs=[
            pl.BlockSpec((1, n_heads, tq, head_dim), lambda b, i: (b, 0, i, 0)),
            pl.BlockSpec((1, n_heads, tq, head_dim), lambda b, i: (b, 0, i, 0)),
            pl.BlockSpec((1, n_heads, tq, head_dim), lambda b, i: (b, 0, i, 0)),
        ],
        compiler_params=_cparams(("parallel", "parallel"), est),
    )(x, p["ln_g"], p["ln_b"], p["wq"], p["wk"], p["wv"])


# ---------------------------------------------------------------------------
# Kernel 2b: flash-style attention + single-matmul output projection + residual
#   grid (B, q-tiles, kv-tiles); key pad mask built in-kernel from prefetched
#   lengths; fully-padded KV tiles skipped; heads batched with einsum.
# ---------------------------------------------------------------------------
def flash_attn_kernel(len_ref, q_ref, k_ref, v_ref, x_ref, wo_ref, o_ref,
                      m_sc, l_sc, acc_sc):
    b = pl.program_id(0)
    ki = pl.program_id(2)
    tk = k_ref.shape[2]
    length = len_ref[b]

    @pl.when(ki == 0)
    def _():
        m_sc[...] = jnp.full(m_sc.shape, -jnp.inf, m_sc.dtype)
        l_sc[...] = jnp.zeros_like(l_sc)
        acc_sc[...] = jnp.zeros_like(acc_sc)

    # Skip KV tiles that are entirely padding (variable-length ASR batches).
    @pl.when(ki * tk < length)
    def _():
        q = q_ref[0]                                   # (H, tq, hd) bf16, pre-scaled
        k = k_ref[0]                                   # (H, tk, hd) bf16
        v = v_ref[0]                                   # (H, tk, hd) bf16
        s = jnp.einsum('hqd,hkd->hqk', q, k,
                       preferred_element_type=jnp.float32)        # (H, tq, tk)

        # key padding mask from prefetched lengths (no (B,T,T) bias in HBM)
        col = ki * tk + lax.broadcasted_iota(jnp.int32, s.shape, 2)
        s = jnp.where(col < length, s, NEG_BIG)

        m_new = jnp.maximum(m_sc[...], jnp.max(s, axis=-1, keepdims=True))
        alpha = jnp.exp(m_sc[...] - m_new)
        p = jnp.exp(s - m_new)
        l_sc[...] = alpha * l_sc[...] + jnp.sum(p, axis=-1, keepdims=True)
        acc_sc[...] = alpha * acc_sc[...] + jnp.einsum(
            'hqk,hkd->hqd', p.astype(v.dtype), v,
            preferred_element_type=jnp.float32)
        m_sc[...] = m_new

    @pl.when(ki == pl.num_programs(2) - 1)
    def _():
        l = l_sc[...]
        # guard length==0 (all tiles skipped -> l==0): emit 0, keep residual only
        inv_l = jnp.where(l > 0.0, pl.reciprocal(l, approx=True), 0.0)
        o_heads = acc_sc[...] * inv_l                              # (H, tq, hd)
        n_heads = o_heads.shape[0]
        # flatten heads along lanes -> (tq, D); ONE full-depth out-proj matmul
        o2d = jnp.concatenate([o_heads[hh] for hh in range(n_heads)], axis=-1)
        proj = jnp.dot(o2d.astype(jnp.bfloat16), wo_ref[...],
                       preferred_element_type=jnp.float32)         # (tq, D)
        o_ref[0] = (x_ref[0].astype(jnp.float32) + proj).astype(o_ref.dtype)


def attn_block(x, q, k, v, wo, lengths, *, n_heads, head_dim):
    B, T, D = x.shape
    tq = _pick_tile(T, (256, 128, 64, 32, 16, 8))
    tk = tq
    n_q, n_kv = T // tq, T // tk

    grid_spec = pltpu.PrefetchScalarGridSpec(
        num_scalar_prefetch=1,
        grid=(B, n_q, n_kv),
        in_specs=[
            pl.BlockSpec((1, n_heads, tq, head_dim), lambda b, qi, ki, L: (b, 0, qi, 0)),
            pl.BlockSpec((1, n_heads, tk, head_dim), lambda b, qi, ki, L: (b, 0, ki, 0)),
            pl.BlockSpec((1, n_heads, tk, head_dim), lambda b, qi, ki, L: (b, 0, ki, 0)),
            pl.BlockSpec((1, tq, D), lambda b, qi, ki, L: (b, qi, 0)),
            pl.BlockSpec((D, D), lambda b, qi, ki, L: (0, 0)),
        ],
        out_specs=pl.BlockSpec((1, tq, D), lambda b, qi, ki, L: (b, qi, 0)),
        scratch_shapes=[
            pltpu.VMEM((n_heads, tq, 1), jnp.float32),           # running max
            pltpu.VMEM((n_heads, tq, 1), jnp.float32),           # running sum
            pltpu.VMEM((n_heads, tq, head_dim), jnp.float32),    # accumulator
        ],
    )
    est = (3 * n_heads * tk * head_dim * 2 + 2 * tq * D * 2 + D * D * 2
           + n_heads * tq * (head_dim + 2) * 4 + n_heads * tq * tk * 4)
    return pl.pallas_call(
        flash_attn_kernel,
        out_shape=jax.ShapeDtypeStruct((B, T, D), jnp.bfloat16),
        grid_spec=grid_spec,
        compiler_params=_cparams(("parallel", "parallel", "arbitrary"), est),
    )(lengths, q, k, v, x, wo)


# ---------------------------------------------------------------------------
# Kernel 3: PreNorm(LN, ConformerConvolution) + residual
#   pw(D->D x2) -> GLU -> masked_fill(pad) -> depthwise conv (pltpu.roll) ->
#   batch_renorm(eval, folded affine) -> swish -> pw(D->D)
# ---------------------------------------------------------------------------
def conv_block_kernel(len_ref, x_ref, g_ref, b_ref, wa_ref, ba_ref, wb_ref,
                      bb_ref, w_dw_ref, b_dw_ref, bn_scale_ref, bn_shift_ref,
                      w_pw2_ref, b_pw2_ref, o_ref, *, kernel_size):
    b = pl.program_id(0)
    length = len_ref[b]

    x = x_ref[0].astype(jnp.float32)                            # (T, D)
    T = x.shape[0]
    pos = lax.broadcasted_iota(jnp.int32, (T, 1), 0)

    h = _layernorm(x, g_ref[...], b_ref[...]).astype(jnp.bfloat16)

    # pointwise conv 1 + GLU as two (D, D) matmuls (no (T, 2D) intermediate)
    ua = jnp.dot(h, wa_ref[...], preferred_element_type=jnp.float32) + ba_ref[...]
    ub = jnp.dot(h, wb_ref[...], preferred_element_type=jnp.float32) + bb_ref[...]
    h = ua * jax.nn.sigmoid(ub)

    # masked_fill of padded timesteps before the depthwise conv (matches ref)
    h = jnp.where(pos < length, h, 0.0)

    # depthwise conv along time ('same', zero padded) via XLU rolls; only one
    # sequence edge can wrap per tap sign -> single compare/select per tap.
    pad = (kernel_size - 1) // 2
    wdw = w_dw_ref[...]                                          # (K, D) f32
    acc = jnp.zeros_like(h)
    for kk in range(kernel_size):
        s = kk - pad
        if s == 0:
            shifted = h
        else:
            shifted = pltpu.roll(h, shift=(-s) % T, axis=0)      # rolled[t]=h[t+s]
            if s > 0:
                shifted = jnp.where(pos < T - s, shifted, 0.0)   # tail rows wrap
            else:
                shifted = jnp.where(pos >= -s, shifted, 0.0)     # head rows wrap
        acc = acc + shifted * wdw[kk:kk + 1, :]
    h = acc + b_dw_ref[...]

    # batch renorm (eval mode running stats, pre-folded into scale/shift)
    h = h * bn_scale_ref[...] + bn_shift_ref[...]

    # swish
    h = h * jax.nn.sigmoid(h)

    # pointwise conv 2
    h = jnp.dot(h.astype(jnp.bfloat16), w_pw2_ref[...],
                preferred_element_type=jnp.float32) + b_pw2_ref[...]

    o_ref[0] = (x + h).astype(o_ref.dtype)


def conv_block(x, lengths, p, *, kernel_size):
    B, T, D = x.shape
    kern = functools.partial(conv_block_kernel, kernel_size=kernel_size)

    def const(shape):
        return pl.BlockSpec(shape, lambda b, L: (0,) * len(shape))

    # split the (D, 2D) GLU pointwise weight into two (D, D) halves
    w_a, w_b = p["w_pw1"][:, :D], p["w_pw1"][:, D:]
    b_a, b_b = p["b_pw1"][:, :D], p["b_pw1"][:, D:]
    # fold eval-mode batch-renorm into a single affine
    bn_scale = p["bn_g"] * lax.rsqrt(p["bn_rv"] + BN_EPS)
    bn_shift = p["bn_b"] - p["bn_rm"] * bn_scale

    grid_spec = pltpu.PrefetchScalarGridSpec(
        num_scalar_prefetch=1,
        grid=(B,),
        in_specs=[
            pl.BlockSpec((1, T, D), lambda b, L: (b, 0, 0)),    # x
            const((1, D)), const((1, D)),                       # ln_g, ln_b
            const((D, D)), const((1, D)),                       # GLU value branch
            const((D, D)), const((1, D)),                       # GLU gate branch
            const((kernel_size, D)), const((1, D)),             # w_dw, b_dw
            const((1, D)), const((1, D)),                       # bn_scale, bn_shift
            const((D, D)), const((1, D)),                       # w_pw2, b_pw2
        ],
        out_specs=pl.BlockSpec((1, T, D), lambda b, L: (b, 0, 0)),
    )
    est = (2 * T * D * _isize(x.dtype) + 3 * D * D * 2 + 3 * T * D * 4
           + (kernel_size + 8) * D * 4)
    # TODO(synk): for very long T, add a time-tile grid axis with a
    # (kernel_size-1)/2 halo so the block fits v7x's 64 MiB VMEM and both
    # TensorCores stay busy when B is small.
    return pl.pallas_call(
        kern,
        out_shape=jax.ShapeDtypeStruct((B, T, D), jnp.bfloat16),
        grid_spec=grid_spec,
        compiler_params=_cparams(("parallel",), est),
    )(lengths, x, p["ln_g"], p["ln_b"], w_a, b_a, w_b, b_b, p["w_dw"],
      p["b_dw"], bn_scale, bn_shift, p["w_pw2"], p["b_pw2"])


# ---------------------------------------------------------------------------
# Glue: full ConformerLayer forward (activations carried bf16 between launches)
# ---------------------------------------------------------------------------
def conformer_layer(x, lengths, params, *, n_heads, head_dim, kernel_size):
    B, T, D = x.shape

    # ff1: x = 0.5 * FF1(LN(x)) + x
    x = ff_block(x.reshape(B * T, D), params["ff1"]).reshape(B, T, D)

    # attention: x = Attn(LN(x)) + x
    q, k, v = qkv_proj(x, params["attn"], n_heads=n_heads, head_dim=head_dim)
    x = attn_block(x, q, k, v, params["attn"]["wo"], lengths,
                   n_heads=n_heads, head_dim=head_dim)

    # conv: x = ConformerConv(LN(x), pad_mask) + x
    x = conv_block(x, lengths, params["conv"], kernel_size=kernel_size)

    # ff2 + norm_out (fused): x = LN(0.5 * FF2(LN(x)) + x)
    x = ff_block(x.reshape(B * T, D), params["ff2"], out_ln=params["norm_out"],
                 out_dtype=jnp.float32).reshape(B, T, D)
    return x


# ---------------------------------------------------------------------------
# Deterministic parameter init (shapes follow the module's __init__)
# ---------------------------------------------------------------------------
def init_params(key, D, hidden, n_heads, head_dim, kernel_size):
    def w(k, shape, dtype=jnp.bfloat16):       # matmul weights stored bf16
        return (0.02 * jax.random.normal(k, shape)).astype(dtype)

    ones = lambda s: jnp.ones(s, jnp.float32)
    zeros = lambda s: jnp.zeros(s, jnp.float32)

    def ff_params(k):
        k1, k2, k3, k4 = jax.random.split(k, 4)
        return dict(ln_g=ones((1, D)), ln_b=zeros((1, D)),
                    w1=w(k1, (D, hidden)), b1=w(k2, (1, hidden), jnp.float32),
                    w2=w(k3, (hidden, D)), b2=w(k4, (1, D), jnp.float32))

    k_ff1, k_ff2, k_attn, k_conv = jax.random.split(key, 4)

    Dh = n_heads * head_dim
    ka = jax.random.split(k_attn, 4)
    attn = dict(ln_g=ones((1, D)), ln_b=zeros((1, D)),
                wq=w(ka[0], (D, Dh)), wk=w(ka[1], (D, Dh)), wv=w(ka[2], (D, Dh)),
                wo=w(ka[3], (Dh, D)))

    kc = jax.random.split(k_conv, 6)
    conv = dict(ln_g=ones((1, D)), ln_b=zeros((1, D)),
                w_pw1=w(kc[0], (D, 2 * D)), b_pw1=w(kc[1], (1, 2 * D), jnp.float32),
                w_dw=w(kc[2], (kernel_size, D), jnp.float32),
                b_dw=w(kc[3], (1, D), jnp.float32),
                bn_g=ones((1, D)), bn_b=zeros((1, D)),
                bn_rm=zeros((1, D)), bn_rv=ones((1, D)),
                w_pw2=w(kc[4], (D, D)), b_pw2=w(kc[5], (1, D), jnp.float32))

    return dict(ff1=ff_params(k_ff1), attn=attn, conv=conv,
                ff2=ff_params(k_ff2),
                norm_out=dict(ln_g=ones((1, D)), ln_b=zeros((1, D))))


if __name__ == "__main__":
    B, T, D = 2, 8, 32
    n_heads, head_dim = 4, 8        # n_heads * head_dim == d_model
    hidden = 4 * D                  # FusedMLP expansion
    kernel_size = 3                 # conformer depthwise conv kernel

    key = jax.random.PRNGKey(0)
    k_params, k_x = jax.random.split(key)
    params = init_params(k_params, D, hidden, n_heads, head_dim, kernel_size)

    x = jax.random.normal(k_x, (B, T, D), dtype=jnp.float32)
    lengths = jnp.array([8, 6], dtype=jnp.int32)   # second sequence has 2 padded steps

    y = conformer_layer(x, lengths, params,
                        n_heads=n_heads, head_dim=head_dim,
                        kernel_size=kernel_size)
    jax.block_until_ready(y)
    assert y.shape == (B, T, D)
    print("KERNEL_OK")
</pallas_src>

<mosaic_0001>
module attributes {stable_mosaic.version = 11 : i64} {
  func.func @ff_block_kernel(%arg0: i32, %arg1: i32, %arg2: memref<16x32xf32, #tpu.memory_space<vmem>>, %arg3: memref<1x32xf32, #tpu.memory_space<vmem>>, %arg4: memref<1x32xf32, #tpu.memory_space<vmem>>, %arg5: memref<32x128xbf16, #tpu.memory_space<vmem>>, %arg6: memref<1x128xf32, #tpu.memory_space<vmem>>, %arg7: memref<128x32xbf16, #tpu.memory_space<vmem>>, %arg8: memref<1x32xf32, #tpu.memory_space<vmem>>, %arg9: memref<16x32xbf16, #tpu.memory_space<vmem>>, %arg10: memref<16x32xbf16, #tpu.memory_space<vmem>>, %arg11: memref<16x32xf32, #tpu.memory_space<vmem>>) attributes {dimension_semantics = [#tpu.dimension_semantics<parallel>, #tpu.dimension_semantics<arbitrary>], iteration_bounds = array<i64: 1, 1>, scalar_prefetch = 0 : i64, scratch_operands = 2 : i64, tpu.core_type = #tpu.core_type<tc>, window_params = [{transform_indices = @transform_0, window_bounds = array<i64: 16, 32>}, {pipeline_mode = #tpu.pipeline_mode<synchronous>, transform_indices = @transform_1, window_bounds = array<i64: 1, 32>}, {pipeline_mode = #tpu.pipeline_mode<synchronous>, transform_indices = @transform_2, window_bounds = array<i64: 1, 32>}, {transform_indices = @transform_3, window_bounds = array<i64: 32, 128>}, {transform_indices = @transform_4, window_bounds = array<i64: 1, 128>}, {transform_indices = @transform_5, window_bounds = array<i64: 128, 32>}, {pipeline_mode = #tpu.pipeline_mode<synchronous>, transform_indices = @transform_6, window_bounds = array<i64: 1, 32>}, {transform_indices = @transform_7, window_bounds = array<i64: 16, 32>}]} {
    %c0_i32 = arith.constant 0 : i32
    %0 = arith.cmpi eq, %arg1, %c0_i32 : i32
    %1 = arith.extui %0 : i1 to i32
    %c0_i32_0 = arith.constant 0 : i32
    %2 = arith.cmpi ne, %1, %c0_i32_0 : i32
    scf.if %2 {
      %c0_19 = arith.constant 0 : index
      %c0_20 = arith.constant 0 : index
      %31 = vector.load %arg2[%c0_19, %c0_20] : memref<16x32xf32, #tpu.memory_space<vmem>>, vector<16x32xf32>
      %c0_21 = arith.constant 0 : index
      %c0_22 = arith.constant 0 : index
      %32 = vector.load %arg3[%c0_21, %c0_22] : memref<1x32xf32, #tpu.memory_space<vmem>>, vector<1x32xf32>
      %c0_23 = arith.constant 0 : index
      %c0_24 = arith.constant 0 : index
      %33 = vector.load %arg4[%c0_23, %c0_24] : memref<1x32xf32, #tpu.memory_space<vmem>>, vector<1x32xf32>
      %cst_25 = arith.constant dense<0.000000e+00> : vector<16xf32>
      %34 = vector.multi_reduction <add>, %31, %cst_25 [1] : vector<16x32xf32> to vector<16xf32>
      %35 = vector.shape_cast %34 : vector<16xf32> to vector<16x1xf32>
      %cst_26 = arith.constant 3.200000e+01 : f32
      %36 = vector.broadcast %cst_26 : f32 to vector<16x1xf32>
      %37 = arith.divf %35, %36 : vector<16x1xf32>
      %38 = vector.broadcast %37 : vector<16x1xf32> to vector<16x32xf32>
      %39 = arith.subf %31, %38 : vector<16x32xf32>
      %40 = arith.mulf %39, %39 : vector<16x32xf32>
      %cst_27 = arith.constant dense<0.000000e+00> : vector<16xf32>
      %41 = vector.multi_reduction <add>, %40, %cst_27 [1] : vector<16x32xf32> to vector<16xf32>
      %42 = vector.shape_cast %41 : vector<16xf32> to vector<16x1xf32>
      %cst_28 = arith.constant 3.200000e+01 : f32
      %43 = vector.broadcast %cst_28 : f32 to vector<16x1xf32>
      %44 = arith.divf %42, %43 : vector<16x1xf32>
      %45 = vector.broadcast %37 : vector<16x1xf32> to vector<16x32xf32>
      %46 = arith.subf %31, %45 : vector<16x32xf32>
      %cst_29 = arith.constant 9.99999974E-6 : f32
      %47 = vector.broadcast %cst_29 : f32 to vector<16x1xf32>
      %48 = arith.addf %44, %47 : vector<16x1xf32>
      %49 = math.rsqrt %48 : vector<16x1xf32>
      %50 = vector.broadcast %49 : vector<16x1xf32> to vector<16x32xf32>
      %51 = arith.mulf %46, %50 : vector<16x32xf32>
      %52 = vector.broadcast %32 : vector<1x32xf32> to vector<16x32xf32>
      %53 = arith.mulf %51, %52 : vector<16x32xf32>
      %54 = vector.broadcast %33 : vector<1x32xf32> to vector<16x32xf32>
      %55 = arith.addf %53, %54 : vector<16x32xf32>
      %56 = arith.truncf %55 : vector<16x32xf32> to vector<16x32xbf16>
      %c0_30 = arith.constant 0 : index
      %c0_31 = arith.constant 0 : index
      %57 = vector.load %arg10[%c0_30, %c0_31] : memref<16x32xbf16, #tpu.memory_space<vmem>>, vector<16x32xbf16>
      tpu.vector_store %arg10[%c0_30, %c0_31], %56 {strides = array<i32>} : memref<16x32xbf16, #tpu.memory_space<vmem>>, vector<16x32xbf16>,
      %cst_32 = arith.constant 0.000000e+00 : f32
      %58 = vector.broadcast %cst_32 : f32 to vector<16x32xf32>
      %c0_33 = arith.constant 0 : index
      %c0_34 = arith.constant 0 : index
      %59 = vector.load %arg11[%c0_33, %c0_34] : memref<16x32xf32, #tpu.memory_space<vmem>>, vector<16x32xf32>
      tpu.vector_store %arg11[%c0_33, %c0_34], %58 {strides = array<i32>} : memref<16x32xf32, #tpu.memory_space<vmem>>, vector<16x32xf32>,
    } else {
    }
    %c0 = arith.constant 0 : index
    %c0_1 = arith.constant 0 : index
    %3 = vector.load %arg10[%c0, %c0_1] : memref<16x32xbf16, #tpu.memory_space<vmem>>, vector<16x32xbf16>
    %c0_2 = arith.constant 0 : index
    %c0_3 = arith.constant 0 : index
    %4 = vector.load %arg5[%c0_2, %c0_3] : memref<32x128xbf16, #tpu.memory_space<vmem>>, vector<32x128xbf16>
    %cst = arith.constant dense<0.000000e+00> : vector<16x128xf32>
    %5 = tpu.matmul %3, %4, %cst {dimension_numbers = #tpu.dot_dimension_numbers<[1], [0], [0], [1], [0, 0, 1, 1], [], []>} : vector<16x32xbf16>, vector<32x128xbf16>, vector<16x128xf32> -> vector<16x128xf32>
    %c0_4 = arith.constant 0 : index
    %c0_5 = arith.constant 0 : index
    %6 = vector.load %arg6[%c0_4, %c0_5] : memref<1x128xf32, #tpu.memory_space<vmem>>, vector<1x128xf32>
    %7 = vector.broadcast %6 : vector<1x128xf32> to vector<16x128xf32>
    %8 = arith.addf %5, %7 : vector<16x128xf32>
    %9 = arith.mulf %8, %8 : vector<16x128xf32>
    %10 = arith.mulf %8, %9 : vector<16x128xf32>
    %cst_6 = arith.constant 4.471500e-02 : f32
    %11 = vector.broadcast %cst_6 : f32 to vector<16x128xf32>
    %12 = arith.mulf %11, %10 : vector<16x128xf32>
    %13 = arith.addf %8, %12 : vector<16x128xf32>
    %cst_7 = arith.constant 0.797884583 : f32
    %14 = vector.broadcast %cst_7 : f32 to vector<16x128xf32>
    %15 = arith.mulf %14, %13 : vector<16x128xf32>
    %16 = math.tanh %15 : vector<16x128xf32>
    %cst_8 = arith.constant 1.000000e+00 : f32
    %17 = vector.broadcast %cst_8 : f32 to vector<16x128xf32>
    %18 = arith.addf %17, %16 : vector<16x128xf32>
    %cst_9 = arith.constant 5.000000e-01 : f32
    %19 = vector.broadcast %cst_9 : f32 to vector<16x128xf32>
    %20 = arith.mulf %19, %18 : vector<16x128xf32>
    %21 = arith.mulf %8, %20 : vector<16x128xf32>
    %c0_10 = arith.constant 0 : index
    %c0_11 = arith.constant 0 : index
    %22 = vector.load %arg11[%c0_10, %c0_11] : memref<16x32xf32, #tpu.memory_space<vmem>>, vector<16x32xf32>
    %23 = arith.truncf %21 : vector<16x128xf32> to vector<16x128xbf16>
    %c0_12 = arith.constant 0 : index
    %c0_13 = arith.constant 0 : index
    %24 = vector.load %arg7[%c0_12, %c0_13] : memref<128x32xbf16, #tpu.memory_space<vmem>>, vector<128x32xbf16>
    %cst_14 = arith.constant dense<0.000000e+00> : vector<16x32xf32>
    %25 = tpu.matmul %23, %24, %cst_14 {dimension_numbers = #tpu.dot_dimension_numbers<[1], [0], [0], [1], [0, 0, 1, 1], [], []>} : vector<16x128xbf16>, vector<128x32xbf16>, vector<16x32xf32> -> vector<16x32xf32>
    %26 = arith.addf %22, %25 : vector<16x32xf32>
    %c0_15 = arith.constant 0 : index
    %c0_16 = arith.constant 0 : index
    %27 = vector.load %arg11[%c0_15, %c0_16] : memref<16x32xf32, #tpu.memory_space<vmem>>, vector<16x32xf32>
    tpu.vector_store %arg11[%c0_15, %c0_16], %26 {strides = array<i32>} : memref<16x32xf32, #tpu.memory_space<vmem>>, vector<16x32xf32>,
    %c0_i32_17 = arith.constant 0 : i32
    %28 = arith.cmpi eq, %arg1, %c0_i32_17 : i32
    %29 = arith.extui %28 : i1 to i32
    %c0_i32_18 = arith.constant 0 : i32
    %30 = arith.cmpi ne, %29, %c0_i32_18 : i32
    scf.if %30 {
      %c0_19 = arith.constant 0 : index
      %c0_20 = arith.constant 0 : index
      %31 = vector.load %arg2[%c0_19, %c0_20] : memref<16x32xf32, #tpu.memory_space<vmem>>, vector<16x32xf32>
      %c0_21 = arith.constant 0 : index
      %c0_22 = arith.constant 0 : index
      %32 = vector.load %arg11[%c0_21, %c0_22] : memref<16x32xf32, #tpu.memory_space<vmem>>, vector<16x32xf32>
      %c0_23 = arith.constant 0 : index
      %c0_24 = arith.constant 0 : index
      %33 = vector.load %arg8[%c0_23, %c0_24] : memref<1x32xf32, #tpu.memory_space<vmem>>, vector<1x32xf32>
      %34 = vector.broadcast %33 : vector<1x32xf32> to vector<16x32xf32>
      %35 = arith.addf %32, %34 : vector<16x32xf32>
      %cst_25 = arith.constant 5.000000e-01 : f32
      %36 = vector.broadcast %cst_25 : f32 to vector<16x32xf32>
      %37 = arith.mulf %36, %35 : vector<16x32xf32>
      %38 = arith.addf %31, %37 : vector<16x32xf32>
      %39 = arith.truncf %38 : vector<16x32xf32> to vector<16x32xbf16>
      %c0_26 = arith.constant 0 : index
      %c0_27 = arith.constant 0 : index
      %40 = vector.load %arg9[%c0_26, %c0_27] : memref<16x32xbf16, #tpu.memory_space<vmem>>, vector<16x32xbf16>
      tpu.vector_store %arg9[%c0_26, %c0_27], %39 {strides = array<i32>} : memref<16x32xbf16, #tpu.memory_space<vmem>>, vector<16x32xbf16>,
    } else {
    }
    return
  }
  func.func @transform_0(%arg0: i32, %arg1: i32) -> (i32, i32) {
    %c0_i32 = arith.constant 0 : i32
    %c0_i32_0 = arith.constant 0 : i32
    return %arg0, %c0_i32 : i32, i32
  }
  func.func @transform_1(%arg0: i32, %arg1: i32) -> (i32, i32) {
    %c0_i32 = arith.constant 0 : i32
    %c0_i32_0 = arith.constant 0 : i32
    %c0_i32_1 = arith.constant 0 : i32
    return %c0_i32, %c0_i32_0 : i32, i32
  }
  func.func @transform_2(%arg0: i32, %arg1: i32) -> (i32, i32) {
    %c0_i32 = arith.constant 0 : i32
    %c0_i32_0 = arith.constant 0 : i32
    %c0_i32_1 = arith.constant 0 : i32
    return %c0_i32, %c0_i32_0 : i32, i32
  }
  func.func @transform_3(%arg0: i32, %arg1: i32) -> (i32, i32) {
    %c0_i32 = arith.constant 0 : i32
    %c0_i32_0 = arith.constant 0 : i32
    return %c0_i32, %arg1 : i32, i32
  }
  func.func @transform_4(%arg0: i32, %arg1: i32) -> (i32, i32) {
    %c0_i32 = arith.constant 0 : i32
    %c0_i32_0 = arith.constant 0 : i32
    return %c0_i32, %arg1 : i32, i32
  }
  func.func @transform_5(%arg0: i32, %arg1: i32) -> (i32, i32) {
    %c0_i32 = arith.constant 0 : i32
    %c0_i32_0 = arith.constant 0 : i32
    return %arg1, %c0_i32 : i32, i32
  }
  func.func @transform_6(%arg0: i32, %arg1: i32) -> (i32, i32) {
    %c0_i32 = arith.constant 0 : i32
    %c0_i32_0 = arith.constant 0 : i32
    %c0_i32_1 = arith.constant 0 : i32
    return %c0_i32, %c0_i32_0 : i32, i32
  }
  func.func @transform_7(%arg0: i32, %arg1: i32) -> (i32, i32) {
    %c0_i32 = arith.constant 0 : i32
    %c0_i32_0 = arith.constant 0 : i32
    return %arg0, %c0_i32 : i32, i32
  }
}

</mosaic_0001>

<bundles_post_ra>
// kernel: tpu_custom_call.1
= control target key start
LH: loop header
LB: loop body
LE: loop exit
PB: predicated region body
PF: predicated region fallthrough
CT: control target
= control target key end

     0   :  { %vm36_vm0 = vcmask 261120   ;;  %s561_s0 = inlined_call_operand.vmem [shape: f32[16,32], index: 0, kind: input, shape index: {}]   ;;  %s562_s1 = inlined_call_operand.vmem [shape: f32[1,32], index: 1, kind: input, shape index: {}]   ;;  %s563_s2 = inlined_call_operand.vmem [shape: f32[1,32], index: 2, kind: input, shape index: {}]   ;;  %s564_s3 = inlined_call_operand.vmem [shape: bf16[32,128], index: 3, kind: input, shape index: {}]   ;;  %s565_s4 = inlined_call_operand.vmem [shape: f32[1,128], index: 4, kind: input, shape index: {}]   ;;  %s566_s5 = inlined_call_operand.vmem [shape: bf16[128,32], index: 5, kind: input, shape index: {}]   ;;  %s567_s6 = inlined_call_operand.vmem [shape: f32[1,32], index: 6, kind: input, shape index: {}]   ;;  %s568_s7 = inlined_call_operand.hbm [shape: bf16[16,32], index: 7, kind: output, shape index: {}]  }
   0x1   :  { %v484_v0 = vld [vmem:[%s561_s0] sm:$0xff]  ;;  %v489_v1 = vld [vmem:[%s561_s0 + $0x8] sm:$0xff] }
   0x2   :  { %v37_v2 = vsel %vm36_vm0, %v484_v0, 0.0  ;;  %v40_v3 = vsel %vm36_vm0, %v489_v1, 0.0 }
   0x3   :  { %38 = vadd.xlane.f32.xlu0 %v37_v2 }
   0x7   :  { %41 = vadd.xlane.f32.xlu0 %v40_v3 }
   0x8   :  { %12 = vsyncpa [#allocation5], 0  ;;  %v394_v14 = vld [vmem:[%s564_s3] sm:$0xff]   ;;  %v436_v15 = vmov 0.0   ;;  %v395_v16 = vld [vmem:[%s564_s3 + $0x8] sm:$0xff]   ;;  %vm437_vm1 = vmmov 0  }
   0x9   :  { %361 = vmatprep.subr.bf16.mxu0 %v436_v15  ;;  %82 = vst.msk [vmem:[#allocation3] sm:$0xff] %vm36_vm0, %v436_v15  ;;  %83 = vst.msk [vmem:[#allocation3 + $0x8] sm:$0xff] %vm36_vm0, %v436_v15  ;;  %369 = vmatprep.subr.bf16.mxu1 %v436_v15  ;;  %v330_v25 = vld [vmem:[%s562_s1] ss:$0 sm:$0xff]  ;;  %v397_v36 = vld [vmem:[%s566_s5 + $0x8] sm:$0xff]   ;;  %s438_s27 = smov [#allocation4]  }
   0xa   :  { %362 = vmatpush3.bf16.msra.mxu0 %v394_v14  ;;  %365 = vmatprep.mubr.msk.bf16.mxu0 %vm437_vm1, %v436_v15  ;;  %v331_v29 = vld [vmem:[%s563_s2] ss:$0 sm:$0xff]  ;;  %v398_v37 = vld [vmem:[%s566_s5 + $0x10] sm:$0xff]   ;;  %v399_v38 = vld [vmem:[%s566_s5 + $0x18] sm:$0xff]   ;;  %s319_s0 = sshll.u32 %s438_s27, 4  ;;  %vm311_vm2 = vcmask 257024   ;;  %s320_s0 = int_to_ptr.vmem [resolvable:$true] %s319_s0 }
   0xb   :  { %363 = vmatprep.subr.bf16.mxu0 %v436_v15  ;;  %385 = vmatprep.mubr.msk.bf16.mxu1 %vm437_vm1, %v436_v15  ;;  %v396_v35 = vld [vmem:[%s566_s5] sm:$0xff]   ;;  %v401_v40 = vld [vmem:[%s566_s5 + $0x28] sm:$0xff]   ;;  %v402_v41 = vld [vmem:[%s566_s5 + $0x30] sm:$0xff]   ;;  %s412_s28 = scalar_lea.vmem %s320_s0, 128  ;;  %p417_p1 = scmp.lt.s32.totalorder %s320_s0, %s320_s0 }
   0xc   :  { %370 = vmatpush3.bf16.msra.mxu1 %v396_v35  ;;  %v400_v39 = vld [vmem:[%s566_s5 + $0x20] sm:$0xff]   ;;  %v403_v42 = vld [vmem:[%s566_s5 + $0x38] sm:$0xff]   ;;  %p413_p0 = scmp.ne.s32.totalorder %s320_s0, %s412_s28  ;;  %p418_p2 = scmp.lt.s32.totalorder %s412_s28, %s412_s28 }
   0xd   :  { %371 = vmatprep.subr.bf16.mxu1 %v436_v15  ;;  %v332_v43 = vld [vmem:[%s565_s4] ss:$0 sm:$0xff] }
   0xe   :  { %364 = vmatpush3.bf16.msra.mxu0 %v395_v16  ;;  %p419_p3 = por %p418_p2, %p417_p1 }
  0x10   :  { %372 = vmatpush3.bf16.msra.mxu1 %v397_v36  ;;  %p420_p4 = pnand %p419_p3, %p413_p0 }
  0x11   :  { %373 = vmatprep.subr.bf16.mxu1 %v436_v15 }
  0x14   :  { %374 = vmatpush3.bf16.msra.mxu1 %v398_v37 }
  0x15   :  { %375 = vmatprep.subr.bf16.mxu1 %v436_v15 }
  0x18   :  { %376 = vmatpush3.bf16.msra.mxu1 %v399_v38 }
  0x19   :  { %377 = vmatprep.subr.bf16.mxu1 %v436_v15 }
  0x1c   :  { %378 = vmatpush3.bf16.msra.mxu1 %v400_v39 }
  0x1d   :  { %379 = vmatprep.subr.bf16.mxu1 %v436_v15 }
  0x20   :  { %380 = vmatpush3.bf16.msra.mxu1 %v401_v40 }
  0x21   :  { %381 = vmatprep.subr.bf16.mxu1 %v436_v15 }
  0x24   :  { %382 = vmatpush3.bf16.msra.mxu1 %v402_v41 }
  0x25   :  { %383 = vmatprep.subr.bf16.mxu1 %v436_v15  ;;  %v344_v15 = vld [vmem:[%s567_s6] ss:$0 sm:$0xff] }
  0x28   :  { %384 = vmatpush3.bf16.msra.mxu1 %v403_v42 }
  0x90   :  { %v39_v4 = vpop.xlane.xlu0 %38 }
  0x91   :  { %v44_v5 = vmul.f32 0.03125, %v39_v4 }
  0x93   :  { %v46_v6 = vsub.f32 %v484_v0, %v44_v5 }
  0x94   :  { %v42_v7 = vpop.xlane.xlu0 %41 }
  0x95   :  { %v45_v8 = vmul.f32 0.03125, %v42_v7  ;;  %v48_v9 = vmul.f32 %v46_v6, %v46_v6  ;;  %v171_v7 = vld [vmem:[#allocation3] sm:$0xff] }
  0x97   :  { %v47_v10 = vsub.f32 %v489_v1, %v45_v8  ;;  %v50_v11 = vsel %vm36_vm0, %v48_v9, 0.0  ;;  %v172_v9 = vld [vmem:[#allocation3 + $0x8] sm:$0xff] }
  0x98   :  { %51 = vadd.xlane.f32.xlu1 %v50_v11 }
  0x99   :  { %v49_v12 = vmul.f32 %v47_v10, %v47_v10 }
  0x9b   :  { %v53_v13 = vsel %vm36_vm0, %v49_v12, 0.0 }
  0x9c   :  { %54 = vadd.xlane.f32.xlu1 %v53_v13 }
 0x125   :  { %v52_v17 = vpop.xlane.xlu1 %51 }
 0x126   :  { %v56_v18 = vmul.f32 0.03125, %v52_v17 }
 0x128   :  { %v58_v19 = vadd.f32 1e-05, %v56_v18 }
 0x129   :  { %v55_v20 = vpop.xlane.xlu1 %54 }
 0x12a   :  { %404 = vrsqrt.f32 %v58_v19  ;;  %v57_v21 = vmul.f32 0.03125, %v55_v20 }
 0x12c   :  { %v59_v22 = vadd.f32 1e-05, %v57_v21 }
 0x12e   :  { %406 = vrsqrt.f32 %v59_v22 }
 0x134   :  { %v405_v23 = vpop.eup %404 }
 0x135   :  { %v62_v24 = vmul.f32 %v405_v23, %v46_v6 }
 0x137   :  { %v70_v27 = vmul.f32 %v330_v25, %v62_v24 }
 0x138   :  { %v407_v26 = vpop.eup %406 }
 0x139   :  { %v63_v28 = vmul.f32 %v407_v26, %v47_v10  ;;  %v78_v31 = vadd.f32 %v331_v29, %v70_v27 }
 0x13b   :  { %v71_v30 = vmul.f32 %v330_v25, %v63_v28 }
 0x13d   :  { %v79_v32 = vadd.f32 %v331_v29, %v71_v30 }
 0x13f   :  { %v80_v33 = vpack.c.bf16 %v79_v32, %v78_v31 }
 0x141   :  { %81 = vst.msk [vmem:[#allocation2] sm:$0xff] %vm36_vm0, %v80_v33 }
 0x148   :  { %v84_v34 = vld [vmem:[#allocation2] sm:$0xff] }
 0x149   :  { %366 = vmatmul.mubr.msk.bf16.vlgmr.msra.gmra.mrb[0].mxu0 %vm36_vm0, %v84_v34 }
 0x21c   :  { %v146_v44 = vpop.f32.mrb[0].mxu0 }
 0x21d   :  { %v147_v45 = vadd.f32 %v332_v43, %v146_v44  ;;  %v367_v46 = vpop.f32.mrb[1].mxu0 }
 0x21e   :  { %v149_v47 = vpop.f32.mrb[2].mxu0 }
 0x21f   :  { %v153_v48 = vmul.f32 %v147_v45, %v147_v45  ;;  %v150_v49 = vadd.f32 %v332_v43, %v149_v47  ;;  %v368_v50 = vpop.f32.mrb[3].mxu0 }
 0x221   :  { %v155_v51 = vmul.f32 %v153_v48, %v147_v45  ;;  %v154_v52 = vmul.f32 %v150_v49, %v150_v49 }
 0x223   :  { %v157_v53 = vmul.f32 0.044715, %v155_v51  ;;  %v156_v54 = vmul.f32 %v154_v52, %v150_v49 }
 0x225   :  { %v159_v55 = vadd.f32 %v157_v53, %v147_v45  ;;  %v158_v56 = vmul.f32 0.044715, %v156_v54 }
 0x227   :  { %v161_v57 = vmul.f32 0.7978846, %v159_v55  ;;  %v160_v58 = vadd.f32 %v158_v56, %v150_v49 }
 0x229   :  { %408 = vtanh.f32 %v161_v57  ;;  %v162_v59 = vmul.f32 0.7978846, %v160_v58 }
 0x22b   :  { %410 = vtanh.f32 %v162_v59 }
 0x233   :  { %v409_v60 = vpop.eup %408 }
 0x234   :  { %v165_v61 = vadd.f32 1.0, %v409_v60 }
 0x235   :  { %v411_v62 = vpop.eup %410 }
 0x236   :  { %v166_v63 = vadd.f32 1.0, %v411_v62  ;;  %v167_v2 = vmul.f32 0.5, %v165_v61 }
 0x238   :  { %v168_v3 = vmul.f32 0.5, %v166_v63  ;;  %v169_v4 = vmul.f32 %v167_v2, %v147_v45 }
 0x23a   :  { %v170_v5 = vmul.f32 %v168_v3, %v150_v49 }
 0x23c   :  { %v173_v6 = vpack.c.bf16 %v170_v5, %v169_v4 }
 0x23e   :  { %386 = vmatmul.mubr.bf16.vlgmr.msra.gmra.mrb[0].mxu1 %v173_v6 }
 0x311   :  { %v272_v8 = vpop.f32.mrb[0].mxu1 }
 0x312   :  { %v279_v10 = vadd.f32 %v272_v8, %v171_v7  ;;  %v387_v11 = vpop.f32.mrb[1].mxu1 }
 0x313   :  { %v275_v12 = vpop.f32.mrb[2].mxu1 }
 0x314   :  { %281 = vst.msk [vmem:[#allocation3] sm:$0xff] %vm36_vm0, %v279_v10  ;;  %v280_v13 = vadd.f32 %v275_v12, %v172_v9  ;;  %v388_v14 = vpop.f32.mrb[3].mxu1 }
 0x316   :  { %282 = vst.msk [vmem:[#allocation3 + $0x8] sm:$0xff] %vm36_vm0, %v280_v13 }
 0x31b   :  { %v288_v16 = vld [vmem:[#allocation3] sm:$0xff] }
 0x31c   :  { %v297_v17 = vadd.f32 %v344_v15, %v288_v16 }
 0x31d   :  { %v289_v18 = vld [vmem:[#allocation3 + $0x8] sm:$0xff] }
 0x31e   :  { %v298_v19 = vadd.f32 %v344_v15, %v289_v18  ;;  %v299_v20 = vmul.f32 0.5, %v297_v17 }
 0x320   :  { %v300_v21 = vmul.f32 0.5, %v298_v19  ;;  %v301_v22 = vadd.f32 %v299_v20, %v484_v0 }
 0x322   :  { %v302_v23 = vadd.f32 %v300_v21, %v489_v1  ;;  %v347_v24 = vpack.c.bf16 %v301_v22, %v301_v22 }
 0x324   :  { %v348_v25 = vpack.c.bf16 %v302_v23, %v302_v23  ;;  %312 = vst.msk [vmem:[#allocation4] sm:$0xf] %vm311_vm2, %v347_v24 }
 0x326   :  { %313 = vst.msk [vmem:[#allocation4 + $0x4] sm:$0xf] %vm311_vm2, %v348_v25 }
 0x327   :  { %423 = shalt.err (!%p420_p4)
}
 0x328   :  { %s424_s30 = scalar_lea.hbm %s568_s7, 128 }
 0x329   :  { %p425_p5 = scmp.ne.s32.totalorder %s568_s7, %s424_s30  ;;  %p428_p6 = scmp.lt.u32.totalorder %s424_s30, %s568_s7 }
 0x32b   :  { %p430_p7 = pnand %p428_p6, %p425_p5 }
 0x32d   :  { %433 = shalt.err (!%p430_p7)
}
 0x32e   :  { %s439_s11 = smov 64   ;;  %s440_s12 = smov 4  }
 0x32f   :  { %325 = dma.vmem_to_hbm [thread:$0]  %s320_s0, 128, %s568_s7, [#allocation5], %s439_s11, %s439_s11, %s440_s12  }
 0x330   :  { %434 = dma.done.wait [#allocation5], 128  }
 0x331   :  { %435 = vsyncadd [#allocation5], 4294967168 }
 0x332   :  { %329 = vsyncpa [#allocation5], 1 }

</bundles_post_ra>
